<compile_context>
chip_gen: v7x
topology: tpu7x:2x2x1
jax: 0.10.0
libtpu: 0.0.40
codegen_flags: <defaults>
</compile_context>

<pallas_src>
import jax
import jax.numpy as jnp
from jax.experimental import pallas as pl
from jax.experimental.pallas import tpu as pltpu


def _round_up(n, m):
    return ((n + m - 1) // m) * m


def _mlp_kernel(x_ref, w1_ref, b1_ref, w2_ref, b2_ref, w3_ref, b3_ref, o_ref):
    """Fused 3-layer MLP forward for one batch tile (weights VMEM-resident)."""
    # In-kernel operand cast (no wrapper-side HBM copy of x). No-op in the f32 path.
    x = x_ref[...].astype(w1_ref.dtype)

    # Layer 1: Linear + ReLU   (Dropout is identity in eval mode). f32 accumulation.
    h = jnp.dot(x, w1_ref[...], preferred_element_type=jnp.float32) + b1_ref[...]
    h = jnp.maximum(h, 0.0)

    # Layer 2: Linear + ReLU   (Dropout is identity in eval mode).
    h = jnp.dot(h.astype(w2_ref.dtype), w2_ref[...],
                preferred_element_type=jnp.float32) + b2_ref[...]
    h = jnp.maximum(h, 0.0)

    # Layer 3: 1-wide projection on VPU (mul) + XLU (lane reduce) instead of pushing an
    # N=1 column through the MXU. w3_ref holds the output weight column as a (1, H2) row.
    row = jnp.sum(h * w3_ref[...].astype(jnp.float32), axis=-1).reshape(1, -1)  # (1, tile)
    row = row + b3_ref[0, 0]                                                    # scalar bias (SMEM)

    # Lane-dense store: batch lives on the lane axis of the output block.
    o_ref[...] = row.astype(o_ref.dtype)
    # TODO(synk): training-mode Dropout would need pltpu.prng_* masking; eval path is identity.


def detection_forward(x, params, *, batch_tile=2048, mxu_dtype=None):
    """Runs the DetectionModel forward pass and returns shape [batch] logits."""
    w1, b1, w2, b2, w3, b3 = params
    B, D = x.shape
    H1 = w1.shape[1]
    H2 = w2.shape[1]
    out_dtype = x.dtype

    # ---- batch tiling --------------------------------------------------------------
    # Tile is a multiple of 128 (lane-dense output), capped at `batch_tile`.
    b128 = _round_up(B, 128)
    tile = max(128, min(_round_up(batch_tile, 128), b128))
    # v7x dual-TC: keep >= 2 grid steps whenever there are >= 2 lane-rows of batch so
    # the "parallel" batch axis actually shards across both TensorCores.
    if b128 >= 256 and tile >= b128:
        tile = max(128, ((b128 // 2) // 128) * 128)
    padded_B = _round_up(B, tile)
    num_tiles = padded_B // tile

    if padded_B != B:  # ragged batch: pad rows, drop them after the call
        x = jnp.pad(x, ((0, padded_B - B), (0, 0)))

    # Output weight column as a (1, H2) row (VPU broadcast); scalar bias for SMEM.
    w3_row = jnp.reshape(w3, (1, H2)).astype(jnp.float32)
    b3_s = jnp.reshape(b3, (1, 1)).astype(jnp.float32)

    if mxu_dtype is not None:
        # bf16 MXU-operand path — valid on ALL generations (v5e/v6e/v7x MXUs are
        # bf16-native; f32 operands take a slower multi-pass matmul). Accumulation
        # stays f32 via preferred_element_type. Only the tiny, VMEM-resident weights
        # are cast here; x is cast inside the kernel (no extra HBM pass over x).
        w1 = w1.astype(mxu_dtype)
        w2 = w2.astype(mxu_dtype)
        # TODO(synk): optional fp8 operand path for v7x behind the same flag.

    # Advisory cost so XLA schedules surrounding ops sensibly around this small call.
    flops = 2 * padded_B * (D * H1 + H1 * H2 + H2)
    bytes_accessed = (
        int(x.size) * x.dtype.itemsize
        + sum(int(a.size) * a.dtype.itemsize for a in (w1, b1, w2, b2, w3_row, b3_s))
        + padded_B * jnp.dtype(out_dtype).itemsize
    )
    cost = pl.CostEstimate(flops=int(flops), transcendentals=0,
                           bytes_accessed=int(bytes_accessed))

    resident = lambda i: (0, 0)  # weights/biases: same (whole) block every grid step

    out = pl.pallas_call(
        _mlp_kernel,
        out_shape=jax.ShapeDtypeStruct((1, padded_B), out_dtype),
        grid_spec=pltpu.PrefetchScalarGridSpec(
            num_scalar_prefetch=0,
            grid=(num_tiles,),
            in_specs=[
                pl.BlockSpec((tile, D), lambda i: (i, 0)),   # x tile (rows -> sublanes)
                pl.BlockSpec((D, H1), resident),             # W1
                pl.BlockSpec((1, H1), resident),             # b1
                pl.BlockSpec((H1, H2), resident),            # W2
                pl.BlockSpec((1, H2), resident),              # b2
                pl.BlockSpec((1, H2), resident),              # W3 (stored as a row)
                pl.BlockSpec(memory_space=pltpu.MemorySpace.SMEM),  # b3 scalar in SMEM
            ],
            out_specs=pl.BlockSpec((1, tile), lambda i: (0, i)),  # lane-dense logits row
        ),
        compiler_params=pltpu.CompilerParams(
            dimension_semantics=("parallel",),  # shards the batch grid across v7x TCs
        ),
        cost_estimate=cost,
    )(x, w1, b1, w2, b2, w3_row, b3_s)

    return out[0, :B]  # drop padding; equivalent to squeeze(-1) of the [B, 1] logits


def init_params(key, layer_dims, dtype=jnp.float32):
    """Deterministic Kaiming-uniform-ish init matching nn.Linear shapes.

    PyTorch Linear(in, out) stores weight [out, in]; we keep W = weight.T -> [in, out].
    """
    params = []
    for i in range(len(layer_dims) - 1):
        fan_in, fan_out = layer_dims[i], layer_dims[i + 1]
        key, kw, kb = jax.random.split(key, 3)
        bound = 1.0 / jnp.sqrt(float(fan_in))
        w = jax.random.uniform(kw, (fan_in, fan_out), dtype, -bound, bound)
        b = jax.random.uniform(kb, (1, fan_out), dtype, -bound, bound)
        params.extend([w, b])
    return tuple(params)


def _reference_forward(x, params):
    w1, b1, w2, b2, w3, b3 = params
    h = jnp.maximum(x @ w1 + b1, 0.0)
    h = jnp.maximum(h @ w2 + b2, 0.0)
    return (h @ w3 + b3)[:, 0]


if __name__ == "__main__":
    # Small config consistent with the module:
    #   input_dim=32, detection_hidden_dims=[64, 32], output dim 1
    input_dim = 32
    hidden_dims = [64, 32]
    layer_dims = [input_dim] + hidden_dims + [1]

    key = jax.random.PRNGKey(0)
    key_x1, key_x2, key_p = jax.random.split(key, 3)
    params = init_params(key_p, layer_dims)

    # --- small batch, single tile (f32 exact-ish check) -----------------------------
    batch1 = 8
    x1 = jax.random.normal(key_x1, (batch1, input_dim), dtype=jnp.float32)
    ref1 = _reference_forward(x1, params)
    out1 = jax.block_until_ready(detection_forward(x1, params))
    assert out1.shape == (batch1,), f"bad output shape {out1.shape}"
    assert jnp.allclose(out1, ref1, atol=1e-4, rtol=1e-4), "mismatch vs reference (f32, small)"

    # --- ragged multi-tile batch (exercises padding + >=2 grid steps for v7x) -------
    batch2 = 300
    x2 = jax.random.normal(key_x2, (batch2, input_dim), dtype=jnp.float32)
    ref2 = _reference_forward(x2, params)
    out2 = jax.block_until_ready(detection_forward(x2, params))
    assert out2.shape == (batch2,), f"bad output shape {out2.shape}"
    assert jnp.allclose(out2, ref2, atol=1e-4, rtol=1e-4), "mismatch vs reference (f32, tiled)"

    # --- bf16 MXU-operand path (all generations), relaxed operand-rounding tolerance -
    out_bf16 = jax.block_until_ready(
        detection_forward(x2, params, mxu_dtype=jnp.bfloat16))
    assert out_bf16.shape == (batch2,), f"bad bf16 output shape {out_bf16.shape}"
    assert bool(jnp.all(jnp.isfinite(out_bf16))), "non-finite bf16 logits"
    assert jnp.allclose(out_bf16, ref2, atol=5e-2, rtol=5e-2), "bf16 path drifted vs f32 reference"

    print("KERNEL_OK")
</pallas_src>

<mosaic_0001>
module attributes {stable_mosaic.version = 11 : i64} {
  func.func @_mlp_kernel(%arg0: i32, %arg1: memref<128x32xf32, #tpu.memory_space<vmem>>, %arg2: memref<32x64xf32, #tpu.memory_space<vmem>>, %arg3: memref<1x64xf32, #tpu.memory_space<vmem>>, %arg4: memref<64x32xf32, #tpu.memory_space<vmem>>, %arg5: memref<1x32xf32, #tpu.memory_space<vmem>>, %arg6: memref<1x32xf32, #tpu.memory_space<vmem>>, %arg7: memref<1x1xf32, #tpu.memory_space<smem>>, %arg8: memref<1x128xf32, #tpu.memory_space<vmem>>) attributes {dimension_semantics = [#tpu.dimension_semantics<parallel>], iteration_bounds = array<i64: 1>, scalar_prefetch = 0 : i64, scratch_operands = 0 : i64, tpu.core_type = #tpu.core_type<tc>, window_params = [{transform_indices = @transform_0, window_bounds = array<i64: 128, 32>}, {pipeline_mode = #tpu.pipeline_mode<synchronous>, transform_indices = @transform_1, window_bounds = array<i64: 32, 64>}, {pipeline_mode = #tpu.pipeline_mode<synchronous>, transform_indices = @transform_2, window_bounds = array<i64: 1, 64>}, {pipeline_mode = #tpu.pipeline_mode<synchronous>, transform_indices = @transform_3, window_bounds = array<i64: 64, 32>}, {pipeline_mode = #tpu.pipeline_mode<synchronous>, transform_indices = @transform_4, window_bounds = array<i64: 1, 32>}, {pipeline_mode = #tpu.pipeline_mode<synchronous>, transform_indices = @transform_5, window_bounds = array<i64: 1, 32>}, {transform_indices = @transform_6, window_bounds = array<i64: 1, 1>}, {transform_indices = @transform_7, window_bounds = array<i64: 1, 128>}]} {
    %c0 = arith.constant 0 : index
    %c0_0 = arith.constant 0 : index
    %0 = vector.load %arg1[%c0, %c0_0] : memref<128x32xf32, #tpu.memory_space<vmem>>, vector<128x32xf32>
    %c0_1 = arith.constant 0 : index
    %c0_2 = arith.constant 0 : index
    %1 = vector.load %arg2[%c0_1, %c0_2] : memref<32x64xf32, #tpu.memory_space<vmem>>, vector<32x64xf32>
    %cst = arith.constant dense<0.000000e+00> : vector<128x64xf32>
    %2 = tpu.matmul %0, %1, %cst {dimension_numbers = #tpu.dot_dimension_numbers<[1], [0], [0], [1], [0, 0, 1, 1], [], []>} : vector<128x32xf32>, vector<32x64xf32>, vector<128x64xf32> -> vector<128x64xf32>
    %c0_3 = arith.constant 0 : index
    %c0_4 = arith.constant 0 : index
    %3 = vector.load %arg3[%c0_3, %c0_4] : memref<1x64xf32, #tpu.memory_space<vmem>>, vector<1x64xf32>
    %4 = vector.broadcast %3 : vector<1x64xf32> to vector<128x64xf32>
    %5 = arith.addf %2, %4 : vector<128x64xf32>
    %cst_5 = arith.constant 0.000000e+00 : f32
    %6 = vector.broadcast %cst_5 : f32 to vector<128x64xf32>
    %7 = arith.maximumf %5, %6 : vector<128x64xf32>
    %c0_6 = arith.constant 0 : index
    %c0_7 = arith.constant 0 : index
    %8 = vector.load %arg4[%c0_6, %c0_7] : memref<64x32xf32, #tpu.memory_space<vmem>>, vector<64x32xf32>
    %cst_8 = arith.constant dense<0.000000e+00> : vector<128x32xf32>
    %9 = tpu.matmul %7, %8, %cst_8 {dimension_numbers = #tpu.dot_dimension_numbers<[1], [0], [0], [1], [0, 0, 1, 1], [], []>} : vector<128x64xf32>, vector<64x32xf32>, vector<128x32xf32> -> vector<128x32xf32>
    %c0_9 = arith.constant 0 : index
    %c0_10 = arith.constant 0 : index
    %10 = vector.load %arg5[%c0_9, %c0_10] : memref<1x32xf32, #tpu.memory_space<vmem>>, vector<1x32xf32>
    %11 = vector.broadcast %10 : vector<1x32xf32> to vector<128x32xf32>
    %12 = arith.addf %9, %11 : vector<128x32xf32>
    %cst_11 = arith.constant 0.000000e+00 : f32
    %13 = vector.broadcast %cst_11 : f32 to vector<128x32xf32>
    %14 = arith.maximumf %12, %13 : vector<128x32xf32>
    %c0_12 = arith.constant 0 : index
    %c0_13 = arith.constant 0 : index
    %15 = vector.load %arg6[%c0_12, %c0_13] : memref<1x32xf32, #tpu.memory_space<vmem>>, vector<1x32xf32>
    %16 = vector.broadcast %15 : vector<1x32xf32> to vector<128x32xf32>
    %17 = arith.mulf %14, %16 : vector<128x32xf32>
    %cst_14 = arith.constant dense<0.000000e+00> : vector<128xf32>
    %18 = vector.multi_reduction <add>, %17, %cst_14 [1] : vector<128x32xf32> to vector<128xf32>
    %19 = vector.shape_cast %18 : vector<128xf32> to vector<1x128xf32>
    %c0_15 = arith.constant 0 : index
    %c0_16 = arith.constant 0 : index
    %20 = memref.load %arg7[%c0_15, %c0_16] : memref<1x1xf32, #tpu.memory_space<smem>>
    %21 = vector.broadcast %20 : f32 to vector<1x128xf32>
    %22 = arith.addf %19, %21 : vector<1x128xf32>
    %c0_17 = arith.constant 0 : index
    %c0_18 = arith.constant 0 : index
    %23 = vector.load %arg8[%c0_17, %c0_18] : memref<1x128xf32, #tpu.memory_space<vmem>>, vector<1x128xf32>
    tpu.vector_store %arg8[%c0_17, %c0_18], %22 {strides = array<i32>} : memref<1x128xf32, #tpu.memory_space<vmem>>, vector<1x128xf32>,
    return
  }
  func.func @transform_0(%arg0: i32) -> (i32, i32) {
    %c0_i32 = arith.constant 0 : i32
    %c0_i32_0 = arith.constant 0 : i32
    return %arg0, %c0_i32 : i32, i32
  }
  func.func @transform_1(%arg0: i32) -> (i32, i32) {
    %c0_i32 = arith.constant 0 : i32
    %c0_i32_0 = arith.constant 0 : i32
    %c0_i32_1 = arith.constant 0 : i32
    return %c0_i32, %c0_i32_0 : i32, i32
  }
  func.func @transform_2(%arg0: i32) -> (i32, i32) {
    %c0_i32 = arith.constant 0 : i32
    %c0_i32_0 = arith.constant 0 : i32
    %c0_i32_1 = arith.constant 0 : i32
    return %c0_i32, %c0_i32_0 : i32, i32
  }
  func.func @transform_3(%arg0: i32) -> (i32, i32) {
    %c0_i32 = arith.constant 0 : i32
    %c0_i32_0 = arith.constant 0 : i32
    %c0_i32_1 = arith.constant 0 : i32
    return %c0_i32, %c0_i32_0 : i32, i32
  }
  func.func @transform_4(%arg0: i32) -> (i32, i32) {
    %c0_i32 = arith.constant 0 : i32
    %c0_i32_0 = arith.constant 0 : i32
    %c0_i32_1 = arith.constant 0 : i32
    return %c0_i32, %c0_i32_0 : i32, i32
  }
  func.func @transform_5(%arg0: i32) -> (i32, i32) {
    %c0_i32 = arith.constant 0 : i32
    %c0_i32_0 = arith.constant 0 : i32
    %c0_i32_1 = arith.constant 0 : i32
    return %c0_i32, %c0_i32_0 : i32, i32
  }
  func.func @transform_6(%arg0: i32) -> (i32, i32) {
    %c0_i32 = arith.constant 0 : i32
    %c0_i32_0 = arith.constant 0 : i32
    %c0_i32_1 = arith.constant 0 : i32
    return %c0_i32, %c0_i32_0 : i32, i32
  }
  func.func @transform_7(%arg0: i32) -> (i32, i32) {
    %c0_i32 = arith.constant 0 : i32
    %c0_i32_0 = arith.constant 0 : i32
    return %c0_i32, %arg0 : i32, i32
  }
}

</mosaic_0001>

<bundles_post_ra>
// kernel: tpu_custom_call.1
= control target key start
LH: loop header
LB: loop body
LE: loop exit
PB: predicated region body
PF: predicated region fallthrough
CT: control target
= control target key end

     0   :  { %vm55_vm0 = vcmask 261120   ;;  %s1218_s0 = inlined_call_operand.vmem [shape: f32[128,32], index: 0, kind: input, shape index: {}]   ;;  %s1219_s1 = inlined_call_operand.vmem [shape: f32[32,64], index: 1, kind: input, shape index: {}]   ;;  %s1220_s2 = inlined_call_operand.vmem [shape: f32[1,64], index: 2, kind: input, shape index: {}]   ;;  %s1221_s3 = inlined_call_operand.vmem [shape: f32[64,32], index: 3, kind: input, shape index: {}]   ;;  %s1222_s4 = inlined_call_operand.vmem [shape: f32[1,32], index: 4, kind: input, shape index: {}]   ;;  %s1223_s5 = inlined_call_operand.vmem [shape: f32[1,32], index: 5, kind: input, shape index: {}]   ;;  %s1224_s6 = inlined_call_operand.<no memory space> [shape: f32[1,1], index: 6, kind: input, shape index: {}]   ;;  %s1225_s7 = inlined_call_operand.hbm [shape: f32[1,128], index: 7, kind: output, shape index: {}]  }
   0x1   :  { %v44_v0 = vld [vmem:[%s1219_s1] sm:$0xff]  ;;  %v45_v1 = vld [vmem:[%s1219_s1 + $0x8] sm:$0xff]  ;;  %v46_v2 = vld [vmem:[%s1219_s1 + $0x10] sm:$0xff] }
   0x2   :  { %v873_v3 = vpack.c.bf16 %v45_v1, %v44_v0  ;;  %v47_v4 = vld [vmem:[%s1219_s1 + $0x18] sm:$0xff]  ;;  %v28_v5 = vld [vmem:[%s1218_s0] sm:$0xff]  ;;  %v266_v8 = vld [vmem:[%s1221_s3 + $0x8] sm:$0xff] }
   0x3   :  { %v877_v6 = vpack.c.bf16 %v47_v4, %v46_v2  ;;  %809 = vmatprep.mubr.msk.f32.mxu0 %vm55_vm0, %v28_v5  ;;  %v265_v7 = vld [vmem:[%s1221_s3] sm:$0xff]  ;;  %v267_v9 = vld [vmem:[%s1221_s3 + $0x10] sm:$0xff]  ;;  %v268_v10 = vld [vmem:[%s1221_s3 + $0x18] sm:$0xff] }
   0x4   :  { %874 = vmatprep.subr.bf16.mxu0 %v873_v3  ;;  %v29_v11 = vld [vmem:[%s1218_s0 + $0x8] sm:$0xff]  ;;  %v881_v12 = vpack.c.bf16 %v266_v8, %v265_v7 }
   0x5   :  { %876 = vmatpush3.bf16.msra.mxu0 %v873_v3 }
   0x6   :  { %878 = vmatprep.subr.bf16.mxu0 %v877_v6 }
   0x9   :  { %880 = vmatpush3.bf16.msra.mxu0 %v877_v6 }
   0xa   :  { %13 = vsyncpa [#allocation4], 0  ;;  %v30_v13 = vld [vmem:[%s1218_s0 + $0x10] sm:$0xff]  ;;  %v885_v14 = vpack.c.bf16 %v268_v10, %v267_v9  ;;  %882 = vmatprep.subr.bf16.mxu0 %v881_v12  ;;  %v269_v15 = vld [vmem:[%s1221_s3 + $0x20] sm:$0xff]  ;;  %897 = vmatprep.subr.bf16.mxu1 %v881_v12  ;;  %vm280_vm1 = vcmask 523264   ;;  %vm606_vm2 = vcmask 130112  }
   0xb   :  { %v270_v16 = vld [vmem:[%s1221_s3 + $0x28] sm:$0xff]  ;;  %901 = vmatpush3.bf16.msra.mxu1 %v881_v12  ;;  %v31_v17 = vld [vmem:[%s1218_s0 + $0x18] sm:$0xff]  ;;  %v32_v18 = vld [vmem:[%s1218_s0 + $0x20] sm:$0xff]  ;;  %vm613_vm3 = vcmask 195712   ;;  %vm620_vm4 = vcmask 261312   ;;  %vm627_vm5 = vcmask 326912  }
   0xc   :  { %810 = vmatmul.mubr.msk.f32.vlgmr.msra.gmra.mrb[0].mxu0 %vm55_vm0, %v29_v11  ;;  %v889_v19 = vpack.c.bf16 %v270_v16, %v269_v15  ;;  %898 = vmatprep.subr.bf16.mxu1 %v885_v14  ;;  %v33_v20 = vld [vmem:[%s1218_s0 + $0x28] sm:$0xff]  ;;  %v34_v21 = vld [vmem:[%s1218_s0 + $0x30] sm:$0xff]  ;;  %v35_v22 = vld [vmem:[%s1218_s0 + $0x38] sm:$0xff]  ;;  %vm634_vm6 = vcmask 392512   ;;  %vm641_vm7 = vcmask 458112   ;;  %vm648_vm8 = vcmask 523712  }
   0xd   :  { %812 = vmatprep.mubr.msk.f32.mxu0 %vm55_vm0, %v30_v13  ;;  %884 = vmatpush3.bf16.msra.mxu0 %v881_v12  ;;  %v36_v23 = vld [vmem:[%s1218_s0 + $0x40] sm:$0xff]  ;;  %v37_v24 = vld [vmem:[%s1218_s0 + $0x48] sm:$0xff]  ;;  %v38_v25 = vld [vmem:[%s1218_s0 + $0x50] sm:$0xff]  ;;  %vm655_vm9 = vcmask 589312   ;;  %vm662_vm10 = vcmask 654912   ;;  %vm669_vm11 = vcmask 720512  }
   0xe   :  { %886 = vmatprep.subr.bf16.mxu0 %v885_v14  ;;  %v39_v26 = vld [vmem:[%s1218_s0 + $0x58] sm:$0xff]  ;;  %v40_v27 = vld [vmem:[%s1218_s0 + $0x60] sm:$0xff]  ;;  %v41_v28 = vld [vmem:[%s1218_s0 + $0x68] sm:$0xff]  ;;  %vm676_vm12 = vcmask 786112   ;;  %vm683_vm13 = vcmask 851712   ;;  %vm690_vm14 = vcmask 917312  }
   0xf   :  { %902 = vmatpush3.bf16.msra.mxu1 %v885_v14  ;;  %v42_v29 = vld [vmem:[%s1218_s0 + $0x70] sm:$0xff]  ;;  %v43_v30 = vld [vmem:[%s1218_s0 + $0x78] sm:$0xff]  ;;  %v722_v34 = vld [vmem:[%s1220_s2] ss:$0 sm:$0xff]  ;;  %vm697_vm15 = vcmask 982912  }
  0x10   :  { %813 = vmatmul.mubr.msk.f32.gmra.mrb[2].mxu0 %vm55_vm0, %v31_v17  ;;  %899 = vmatprep.subr.bf16.mxu1 %v889_v19  ;;  %v271_v31 = vld [vmem:[%s1221_s3 + $0x30] sm:$0xff]  ;;  %v272_v32 = vld [vmem:[%s1221_s3 + $0x38] sm:$0xff] }
  0x11   :  { %815 = vmatprep.mubr.msk.f32.mxu0 %vm55_vm0, %v32_v18  ;;  %888 = vmatpush3.bf16.msra.mxu0 %v885_v14  ;;  %v893_v33 = vpack.c.bf16 %v272_v32, %v271_v31 }
  0x12   :  { %890 = vmatprep.subr.bf16.mxu0 %v889_v19 }
  0x13   :  { %903 = vmatpush3.bf16.msra.mxu1 %v889_v19 }
  0x14   :  { %816 = vmatmul.mubr.msk.f32.gmra.mrb[4].mxu0 %vm55_vm0, %v33_v20  ;;  %900 = vmatprep.subr.bf16.mxu1 %v893_v33 }
  0x15   :  { %818 = vmatprep.mubr.msk.f32.mxu0 %vm55_vm0, %v34_v21  ;;  %892 = vmatpush3.bf16.msra.mxu0 %v889_v19  ;;  %v1093_v19 = vld [vmem:[%s1222_s4] ss:$0 sm:$0xff] }
  0x16   :  { %894 = vmatprep.subr.bf16.mxu0 %v893_v33 }
  0x17   :  { %904 = vmatpush3.bf16.msra.mxu1 %v893_v33 }
  0x18   :  { %819 = vmatmul.mubr.msk.f32.gmra.mrb[6].mxu0 %vm55_vm0, %v35_v22 }
  0x19   :  { %821 = vmatprep.mubr.msk.f32.mxu0 %vm55_vm0, %v36_v23  ;;  %896 = vmatpush3.bf16.msra.mxu0 %v893_v33 }
  0x1c   :  { %822 = vmatmul.mubr.msk.f32.gmra.mrb[8].mxu0 %vm55_vm0, %v37_v24  ;;  %v1100_v24 = vld [vmem:[%s1223_s5] ss:$0 sm:$0xff] }
  0x1d   :  { %824 = vmatprep.mubr.msk.f32.mxu0 %vm55_vm0, %v38_v25 }
  0x20   :  { %825 = vmatmul.mubr.msk.f32.gmra.mrb[10].mxu0 %vm55_vm0, %v39_v26 }
  0x21   :  { %827 = vmatprep.mubr.msk.f32.mxu0 %vm55_vm0, %v40_v27 }
  0x24   :  { %828 = vmatmul.mubr.msk.f32.gmra.mrb[12].mxu0 %vm55_vm0, %v41_v28 }
  0x25   :  { %830 = vmatprep.mubr.msk.f32.mxu0 %vm55_vm0, %v42_v29 }
  0x28   :  { %831 = vmatmul.mubr.msk.f32.gmra.mrb[14].mxu0 %vm55_vm0, %v43_v30 }
  0xdf   :  { %v811_v35 = vpop.f32.mrb[0].mxu0 }
  0xe0   :  { %v176_v36 = vadd.f32 %v811_v35, %v722_v34  ;;  %v170_v37 = vpop.f32.mrb[1].mxu0 }
  0xe1   :  { %v171_v38 = vadd.f32 %v722_v34, %v170_v37 }
  0xe2   :  { %v250_v41 = vmax.f32 %v176_v36, 0.0 }
  0xe3   :  { %v249_v39 = vmax.f32 %v171_v38, 0.0  ;;  %v814_v40 = vpop.f32.mrb[2].mxu0 }
  0xe4   :  { %v186_v42 = vadd.f32 %v814_v40, %v722_v34  ;;  %v180_v43 = vpop.f32.mrb[3].mxu0 }
  0xe5   :  { %v181_v44 = vadd.f32 %v722_v34, %v180_v43  ;;  %849 = vmatprep.mubr.msk.f32.mxu0 %vm280_vm1, %v249_v39 }
  0xe6   :  { %850 = vmatmul.mubr.msk.f32.vlgmr.msra.gmra.mrb[16].mxu0 %vm280_vm1, %v250_v41  ;;  %v252_v47 = vmax.f32 %v186_v42, 0.0 }
  0xe7   :  { %v251_v45 = vmax.f32 %v181_v44, 0.0  ;;  %v817_v46 = vpop.f32.mrb[4].mxu0 }
  0xe8   :  { %v196_v48 = vadd.f32 %v817_v46, %v722_v34  ;;  %v190_v49 = vpop.f32.mrb[5].mxu0 }
  0xe9   :  { %v191_v50 = vadd.f32 %v722_v34, %v190_v49  ;;  %852 = vmatprep.mubr.msk.f32.mxu1 %vm280_vm1, %v251_v45 }
  0xea   :  { %v254_v51 = vmax.f32 %v196_v48, 0.0  ;;  %853 = vmatmul.mubr.msk.f32.vlgmr.msra.gmra.mrb[0].mxu1 %vm280_vm1, %v252_v47 }
  0xeb   :  { %v253_v52 = vmax.f32 %v191_v50, 0.0  ;;  %v820_v53 = vpop.f32.mrb[6].mxu0 }
  0xec   :  { %v206_v54 = vadd.f32 %v820_v53, %v722_v34  ;;  %v200_v55 = vpop.f32.mrb[7].mxu0 }
  0xed   :  { %v201_v56 = vadd.f32 %v722_v34, %v200_v55  ;;  %855 = vmatprep.mubr.msk.f32.mxu1 %vm280_vm1, %v253_v52 }
  0xee   :  { %v256_v57 = vmax.f32 %v206_v54, 0.0  ;;  %856 = vmatmul.mubr.msk.f32.gmra.mrb[2].mxu1 %vm280_vm1, %v254_v51 }
  0xef   :  { %v255_v58 = vmax.f32 %v201_v56, 0.0  ;;  %v823_v59 = vpop.f32.mrb[8].mxu0 }
  0xf0   :  { %v216_v60 = vadd.f32 %v823_v59, %v722_v34  ;;  %v210_v61 = vpop.f32.mrb[9].mxu0 }
  0xf1   :  { %v211_v62 = vadd.f32 %v722_v34, %v210_v61  ;;  %858 = vmatprep.mubr.msk.f32.mxu1 %vm280_vm1, %v255_v58 }
  0xf2   :  { %v258_v63 = vmax.f32 %v216_v60, 0.0  ;;  %859 = vmatmul.mubr.msk.f32.gmra.mrb[4].mxu1 %vm280_vm1, %v256_v57 }
  0xf3   :  { %v257_v0 = vmax.f32 %v211_v62, 0.0  ;;  %v826_v1 = vpop.f32.mrb[10].mxu0 }
  0xf4   :  { %v226_v2 = vadd.f32 %v826_v1, %v722_v34  ;;  %v220_v3 = vpop.f32.mrb[11].mxu0 }
  0xf5   :  { %v221_v4 = vadd.f32 %v722_v34, %v220_v3  ;;  %861 = vmatprep.mubr.msk.f32.mxu1 %vm280_vm1, %v257_v0 }
  0xf6   :  { %v260_v5 = vmax.f32 %v226_v2, 0.0  ;;  %862 = vmatmul.mubr.msk.f32.gmra.mrb[6].mxu1 %vm280_vm1, %v258_v63 }
  0xf7   :  { %v259_v6 = vmax.f32 %v221_v4, 0.0  ;;  %v829_v7 = vpop.f32.mrb[12].mxu0 }
  0xf8   :  { %v236_v8 = vadd.f32 %v829_v7, %v722_v34  ;;  %v230_v9 = vpop.f32.mrb[13].mxu0 }
  0xf9   :  { %v231_v10 = vadd.f32 %v722_v34, %v230_v9  ;;  %864 = vmatprep.mubr.msk.f32.mxu1 %vm280_vm1, %v259_v6 }
  0xfa   :  { %v262_v11 = vmax.f32 %v236_v8, 0.0  ;;  %865 = vmatmul.mubr.msk.f32.gmra.mrb[8].mxu1 %vm280_vm1, %v260_v5 }
  0xfb   :  { %v261_v12 = vmax.f32 %v231_v10, 0.0  ;;  %v832_v13 = vpop.f32.mrb[14].mxu0 }
  0xfc   :  { %v246_v14 = vadd.f32 %v832_v13, %v722_v34  ;;  %v240_v15 = vpop.f32.mrb[15].mxu0 }
  0xfd   :  { %v241_v16 = vadd.f32 %v722_v34, %v240_v15  ;;  %867 = vmatprep.mubr.msk.f32.mxu1 %vm280_vm1, %v261_v12 }
  0xfe   :  { %v264_v17 = vmax.f32 %v246_v14, 0.0  ;;  %868 = vmatmul.mubr.msk.f32.gmra.mrb[10].mxu1 %vm280_vm1, %v262_v11 }
  0xff   :  { %v263_v18 = vmax.f32 %v241_v16, 0.0 }
 0x101   :  { %870 = vmatprep.mubr.msk.f32.mxu1 %vm280_vm1, %v263_v18 }
 0x102   :  { %871 = vmatmul.mubr.msk.f32.gmra.mrb[12].mxu1 %vm280_vm1, %v264_v17 }
 0x1b9   :  { %v851_v20 = vpop.f32.mrb[16].mxu0 }
 0x1ba   :  { %v401_v21 = vadd.f32 %v851_v20, %v1093_v19  ;;  %v395_v22 = vpop.f32.mrb[17].mxu0 }
 0x1bb   :  { %v396_v23 = vadd.f32 %v1093_v19, %v395_v22 }
 0x1bc   :  { %v475_v25 = vmax.f32 %v401_v21, 0.0 }
 0x1bd   :  { %v474_v26 = vmax.f32 %v396_v23, 0.0  ;;  %v854_v27 = vpop.f32.mrb[0].mxu1 }
 0x1be   :  { %v411_v28 = vadd.f32 %v854_v27, %v1093_v19  ;;  %v405_v29 = vpop.f32.mrb[1].mxu1  ;;  %v498_v30 = vmul.f32 %v1100_v24, %v475_v25 }
 0x1bf   :  { %v406_v31 = vadd.f32 %v1093_v19, %v405_v29  ;;  %v497_v34 = vmul.f32 %v1100_v24, %v474_v26 }
 0x1c0   :  { %v477_v32 = vmax.f32 %v411_v28, 0.0  ;;  %v516_v33 = vsel %vm55_vm0, %v498_v30, 0.0 }
 0x1c1   :  { %v476_v35 = vmax.f32 %v406_v31, 0.0  ;;  %v857_v36 = vpop.f32.mrb[2].mxu1  ;;  %517 = vadd.xlane.f32.xlu0 %v516_v33  ;;  %v513_v43 = vsel %vm55_vm0, %v497_v34, 0.0 }
 0x1c2   :  { %v421_v37 = vadd.f32 %v857_v36, %v1093_v19  ;;  %v415_v38 = vpop.f32.mrb[3].mxu1  ;;  %v500_v39 = vmul.f32 %v1100_v24, %v477_v32 }
 0x1c3   :  { %v416_v40 = vadd.f32 %v1093_v19, %v415_v38  ;;  %v499_v44 = vmul.f32 %v1100_v24, %v476_v35  ;;  %v595_v38 = vlaneseq }
 0x1c4   :  { %v479_v41 = vmax.f32 %v421_v37, 0.0  ;;  %v522_v42 = vsel %vm55_vm0, %v500_v39, 0.0 }
 0x1c5   :  { %v478_v45 = vmax.f32 %v416_v40, 0.0  ;;  %523 = vadd.xlane.f32.xlu1 %v522_v42  ;;  %v860_v46 = vpop.f32.mrb[4].mxu1  ;;  %514 = vadd.xlane.f32.xlu0 %v513_v43  ;;  %v519_v52 = vsel %vm55_vm0, %v499_v44, 0.0  ;;  %v1148_v39 = vand.u32 127, %v595_v38  ;;  %v1156_v43 = vstv %s1224_s6  ;;  %s930_s6 = smov [#allocation3]  }
 0x1c6   :  { %v431_v47 = vadd.f32 %v860_v46, %v1093_v19  ;;  %v425_v48 = vpop.f32.mrb[5].mxu1  ;;  %v502_v53 = vmul.f32 %v1100_v24, %v479_v41  ;;  %v1150_v41 = vshrl.u32 %v595_v38, 7  ;;  %s714_s12 = sshll.u32 %s930_s6, 4  ;;  %s715_s12 = int_to_ptr.vmem [resolvable:$true] %s714_s12 }
 0x1c7   :  { %v426_v49 = vadd.f32 %v1093_v19, %v425_v48  ;;  %v501_v50 = vmul.f32 %v1100_v24, %v478_v45  ;;  %v601_v42 = vadd.s32 4294967288, %v1148_v39  ;;  %v615_v44 = vadd.s32 4294967272, %v1148_v39  ;;  %s906_s13 = scalar_lea.vmem %s715_s12, 16  ;;  %s910_s14 = scalar_lea.vmem %s715_s12, 32 }
 0x1c8   :  { %v481_v51 = vmax.f32 %v431_v47, 0.0  ;;  %v528_v62 = vsel %vm55_vm0, %v502_v53, 0.0  ;;  %v599_v46 = vsub.s32 %v1148_v39, %v1150_v41  ;;  %v622_v48 = vadd.s32 4294967264, %v1148_v39  ;;  %p907_p0 = scmp.ne.s32.totalorder %s715_s12, %s906_s13  ;;  %p911_p1 = scmp.lt.s32.totalorder %s715_s12, %s715_s12 }
 0x1c9   :  { %v480_v54 = vmax.f32 %v426_v49, 0.0  ;;  %v863_v55 = vpop.f32.mrb[6].mxu1  ;;  %520 = vadd.xlane.f32.xlu1 %v519_v52  ;;  %v525_v56 = vsel %vm55_vm0, %v501_v50, 0.0  ;;  %v604_v50 = vsub.s32 %v601_v42, %v1150_v41  ;;  %v629_v52 = vadd.s32 4294967256, %v1148_v39  ;;  %p912_p2 = scmp.lt.s32.totalorder %s910_s14, %s906_s13 }
 0x1ca   :  { %v441_v57 = vadd.f32 %v863_v55, %v1093_v19  ;;  %v435_v58 = vpop.f32.mrb[7].mxu1  ;;  %526 = vadd.xlane.f32.xlu0 %v525_v56  ;;  %v504_v63 = vmul.f32 %v1100_v24, %v481_v51  ;;  %v618_v55 = vsub.s32 %v615_v44, %v1150_v41 }
 0x1cb   :  { %v436_v59 = vadd.f32 %v1093_v19, %v435_v58  ;;  %v503_v60 = vmul.f32 %v1100_v24, %v480_v54  ;;  %v636_v54 = vadd.s32 4294967248, %v1148_v39  ;;  %p913_p3 = por %p912_p2, %p911_p1 }
 0x1cc   :  { %v483_v61 = vmax.f32 %v441_v57, 0.0  ;;  %v534_v8 = vsel %vm55_vm0, %v504_v63, 0.0 }
 0x1cd   :  { %v482_v0 = vmax.f32 %v436_v59, 0.0  ;;  %v866_v1 = vpop.f32.mrb[8].mxu1  ;;  %529 = vadd.xlane.f32.xlu1 %v528_v62  ;;  %v531_v2 = vsel %vm55_vm0, %v503_v60, 0.0  ;;  %v625_v59 = vsub.s32 %v622_v48, %v1150_v41  ;;  %v692_v48 = vadd.s32 4294967184, %v1148_v39  ;;  %p914_p4 = pnand %p913_p3, %p907_p0 }
 0x1ce   :  { %v451_v3 = vadd.f32 %v866_v1, %v1093_v19  ;;  %v445_v4 = vpop.f32.mrb[9].mxu1  ;;  %532 = vadd.xlane.f32.xlu0 %v531_v2  ;;  %v506_v9 = vmul.f32 %v1100_v24, %v483_v61  ;;  %v639_v2 = vsub.s32 %v636_v54, %v1150_v41 }
 0x1cf   :  { %v446_v5 = vadd.f32 %v1093_v19, %v445_v4  ;;  %v505_v6 = vmul.f32 %v1100_v24, %v482_v0  ;;  %v632_v0 = vsub.s32 %v629_v52, %v1150_v41 }
 0x1d0   :  { %v485_v7 = vmax.f32 %v451_v3, 0.0  ;;  %v540_v18 = vsel %vm55_vm0, %v506_v9, 0.0  ;;  %v643_v3 = vadd.s32 4294967240, %v1148_v39 }
 0x1d1   :  { %v484_v10 = vmax.f32 %v446_v5, 0.0  ;;  %v869_v11 = vpop.f32.mrb[10].mxu1  ;;  %535 = vadd.xlane.f32.xlu1 %v534_v8  ;;  %v537_v12 = vsel %vm55_vm0, %v505_v6, 0.0  ;;  %v650_v8 = vadd.s32 4294967232, %v1148_v39 }
 0x1d2   :  { %v461_v13 = vadd.f32 %v869_v11, %v1093_v19  ;;  %v455_v14 = vpop.f32.mrb[11].mxu1  ;;  %538 = vadd.xlane.f32.xlu0 %v537_v12  ;;  %v508_v20 = vmul.f32 %v1100_v24, %v485_v7 }
 0x1d3   :  { %v456_v15 = vadd.f32 %v1093_v19, %v455_v14  ;;  %v507_v16 = vmul.f32 %v1100_v24, %v484_v10 }
 0x1d4   :  { %v487_v17 = vmax.f32 %v461_v13, 0.0  ;;  %v546_v30 = vsel %vm55_vm0, %v508_v20, 0.0 }
 0x1d5   :  { %v486_v21 = vmax.f32 %v456_v15, 0.0  ;;  %v872_v22 = vpop.f32.mrb[12].mxu1  ;;  %541 = vadd.xlane.f32.xlu1 %v540_v18  ;;  %v543_v23 = vsel %vm55_vm0, %v507_v16, 0.0  ;;  %v646_v16 = vsub.s32 %v643_v3, %v1150_v41 }
 0x1d6   :  { %v471_v25 = vadd.f32 %v872_v22, %v1093_v19  ;;  %v465_v26 = vpop.f32.mrb[13].mxu1  ;;  %544 = vadd.xlane.f32.xlu0 %v543_v23  ;;  %v510_v31 = vmul.f32 %v1100_v24, %v487_v17  ;;  %v657_v17 = vadd.s32 4294967224, %v1148_v39  ;;  %v664_v22 = vadd.s32 4294967216, %v1148_v39 }
 0x1d7   :  { %v466_v27 = vadd.f32 %v1093_v19, %v465_v26  ;;  %v509_v28 = vmul.f32 %v1100_v24, %v486_v21  ;;  %v653_v21 = vsub.s32 %v650_v8, %v1150_v41 }
 0x1d8   :  { %v489_v29 = vmax.f32 %v471_v25, 0.0  ;;  %v552_v35 = vsel %vm55_vm0, %v510_v31, 0.0 }
 0x1d9   :  { %v488_v32 = vmax.f32 %v466_v27, 0.0  ;;  %547 = vadd.xlane.f32.xlu1 %v546_v30  ;;  %v549_v33 = vsel %vm55_vm0, %v509_v28, 0.0  ;;  %v671_v30 = vadd.s32 4294967208, %v1148_v39 }
 0x1da   :  { %550 = vadd.xlane.f32.xlu0 %v549_v33  ;;  %v512_v36 = vmul.f32 %v1100_v24, %v489_v29  ;;  %v660_v29 = vsub.s32 %v657_v17, %v1150_v41 }
 0x1db   :  { %v511_v34 = vmul.f32 %v1100_v24, %v488_v32  ;;  %v608_v24 = vadd.s32 4294967280, %v1148_v39  ;;  %v674_v42 = vsub.s32 %v671_v30, %v1150_v41 }
 0x1dc   :  { %v558_v37 = vsel %vm55_vm0, %v512_v36, 0.0 }
 0x1dd   :  { %553 = vadd.xlane.f32.xlu1 %v552_v35  ;;  %v555_v19 = vsel %vm55_vm0, %v511_v34, 0.0  ;;  %v611_v53 = vsub.s32 %v608_v24, %v1150_v41  ;;  %v667_v34 = vsub.s32 %v664_v22, %v1150_v41  ;;  %v678_v35 = vadd.s32 4294967200, %v1148_v39 }
 0x1de   :  { %556 = vadd.xlane.f32.xlu0 %v555_v19  ;;  %v685_v24 = vadd.s32 4294967192, %v1148_v39  ;;  %vm704_vm0 = vcmask 1048512  }
 0x1e0   :  { %v688_v54 = vsub.s32 %v685_v24, %v1150_v41 }
 0x1e1   :  { %559 = vadd.xlane.f32.xlu1 %v558_v37 }
 0x24e   :  { %v518_v40 = vpop.xlane.xlu0 %517 }
 0x24f   :  { %v564_v51 = vadd.f32 %v1156_v43, %v518_v40 }
 0x251   :  { %v605_v62 = vrot.slane %v564_v51, %v604_v50 }
 0x252   :  { %v524_v45 = vpop.xlane.xlu1 %523  ;;  %v515_v47 = vpop.xlane.xlu0 %514 }
 0x253   :  { %v563_v49 = vadd.f32 %v1156_v43, %v515_v47  ;;  %v566_v56 = vadd.f32 %v1156_v43, %v524_v45  ;;  %v681_v47 = vsub.s32 %v678_v35, %v1150_v41 }
 0x255   :  { %v600_v57 = vrot.slane %v563_v49, %v599_v46  ;;  %v619_v4 = vrot.slane %v566_v56, %v618_v55  ;;  %v699_v55 = vadd.s32 4294967176, %v1148_v39 }
 0x256   :  { %v521_v58 = vpop.xlane.xlu1 %520 }
 0x257   :  { %v565_v60 = vadd.f32 %v1156_v43, %v521_v58  ;;  %v527_v61 = vpop.xlane.xlu0 %526  ;;  %v607_v5 = vsel %vm606_vm2, %v605_v62, %v600_v57 }
 0x258   :  { %v567_v63 = vadd.f32 %v1156_v43, %v527_v61 }
 0x259   :  { %v612_v1 = vrot.slane %v565_v60, %v611_v53 }
 0x25a   :  { %v626_v6 = vrot.slane %v567_v63, %v625_v59  ;;  %v530_v7 = vpop.xlane.xlu1 %529  ;;  %v695_v59 = vsub.s32 %v692_v48, %v1150_v41 }
 0x25b   :  { %v614_v9 = vsel %vm613_vm3, %v612_v1, %v607_v5  ;;  %v568_v10 = vadd.f32 %v1156_v43, %v530_v7  ;;  %v533_v11 = vpop.xlane.xlu0 %532  ;;  %v702_v1 = vsub.s32 %v699_v55, %v1150_v41 }
 0x25c   :  { %v621_v12 = vsel %vm620_vm4, %v619_v4, %v614_v9  ;;  %v569_v13 = vadd.f32 %v1156_v43, %v533_v11 }
 0x25d   :  { %v628_v14 = vsel %vm627_vm5, %v626_v6, %v621_v12  ;;  %v633_v15 = vrot.slane %v568_v10, %v632_v0 }
 0x25e   :  { %v640_v18 = vrot.slane %v569_v13, %v639_v2  ;;  %v536_v20 = vpop.xlane.xlu1 %535 }
 0x25f   :  { %v635_v23 = vsel %vm634_vm6, %v633_v15, %v628_v14  ;;  %v570_v25 = vadd.f32 %v1156_v43, %v536_v20  ;;  %v539_v26 = vpop.xlane.xlu0 %538 }
 0x260   :  { %v571_v27 = vadd.f32 %v1156_v43, %v539_v26  ;;  %v642_v31 = vsel %vm641_vm7, %v640_v18, %v635_v23 }
 0x261   :  { %v647_v28 = vrot.slane %v570_v25, %v646_v16 }
 0x262   :  { %v654_v32 = vrot.slane %v571_v27, %v653_v21  ;;  %v542_v33 = vpop.xlane.xlu1 %541 }
 0x263   :  { %v649_v36 = vsel %vm648_vm8, %v647_v28, %v642_v31  ;;  %v572_v19 = vadd.f32 %v1156_v43, %v542_v33  ;;  %v545_v37 = vpop.xlane.xlu0 %544 }
 0x264   :  { %v573_v38 = vadd.f32 %v1156_v43, %v545_v37  ;;  %v656_v44 = vsel %vm655_vm9, %v654_v32, %v649_v36 }
 0x265   :  { %v661_v40 = vrot.slane %v572_v19, %v660_v29 }
 0x266   :  { %v668_v45 = vrot.slane %v573_v38, %v667_v34  ;;  %v548_v46 = vpop.xlane.xlu1 %547 }
 0x267   :  { %v663_v49 = vsel %vm662_vm10, %v661_v40, %v656_v44  ;;  %v574_v50 = vadd.f32 %v1156_v43, %v548_v46  ;;  %v551_v51 = vpop.xlane.xlu0 %550 }
 0x268   :  { %v575_v52 = vadd.f32 %v1156_v43, %v551_v51  ;;  %v670_v56 = vsel %vm669_vm11, %v668_v45, %v663_v49 }
 0x269   :  { %v675_v53 = vrot.slane %v574_v50, %v674_v42 }
 0x26a   :  { %v682_v57 = vrot.slane %v575_v52, %v681_v47  ;;  %v554_v58 = vpop.xlane.xlu1 %553 }
 0x26b   :  { %v677_v60 = vsel %vm676_vm12, %v675_v53, %v670_v56  ;;  %v576_v61 = vadd.f32 %v1156_v43, %v554_v58  ;;  %v557_v62 = vpop.xlane.xlu0 %556 }
 0x26c   :  { %v577_v63 = vadd.f32 %v1156_v43, %v557_v62  ;;  %v684_v2 = vsel %vm683_vm13, %v682_v57, %v677_v60 }
 0x26d   :  { %v689_v0 = vrot.slane %v576_v61, %v688_v54 }
 0x26e   :  { %v696_v3 = vrot.slane %v577_v63, %v695_v59  ;;  %v560_v4 = vpop.xlane.xlu1 %559 }
 0x26f   :  { %v578_v39 = vadd.f32 %v1156_v43, %v560_v4  ;;  %v691_v5 = vsel %vm690_vm14, %v689_v0, %v684_v2 }
 0x270   :  { %v698_v7 = vsel %vm697_vm15, %v696_v3, %v691_v5 }
 0x271   :  { %v703_v6 = vrot.slane %v578_v39, %v702_v1 }
 0x273   :  { %v705_v8 = vsel %vm704_vm0, %v703_v6, %v698_v7 }
 0x274   :  { %707 = vst [vmem:[#allocation3] sm:$0x1] %v705_v8 }
 0x275   :  { %917 = shalt.err (!%p914_p4)
}
 0x276   :  { %s918_s16 = scalar_lea.hbm %s1225_s7, 16 }
 0x277   :  { %p919_p5 = scmp.ne.s32.totalorder %s1225_s7, %s918_s16  ;;  %p922_p6 = scmp.lt.u32.totalorder %s918_s16, %s1225_s7 }
 0x279   :  { %p924_p7 = pnand %p922_p6, %p919_p5 }
 0x27b   :  { %927 = shalt.err (!%p924_p7)
}
 0x27c   :  { %717 = dma.vmem_to_hbm [thread:$0]  %s715_s12, 16, %s1225_s7, [#allocation4]  }
 0x27d   :  { %928 = dma.done.wait [#allocation4], 16  }
 0x27e   :  { %929 = vsyncadd [#allocation4], 4294967280 }
 0x27f   :  { %721 = vsyncpa [#allocation4], 1 }

</bundles_post_ra>
